<compile_context>
chip_gen: v5e
topology: v5e:2x2
jax: 0.10.0
libtpu: 0.0.40
codegen_flags: <defaults>
</compile_context>

<pallas_src>
import functools

import jax
import jax.numpy as jnp
from jax.experimental import pallas as pl
from jax.experimental.pallas import tpu as pltpu


def _round_up(x: int, m: int) -> int:
    return ((x + m - 1) // m) * m


def _cdiv(a: int, b: int) -> int:
    return -(-a // b)


def _stroke_kernel(strokes_ref, coords_ref, out_ref, *, width):
    """One grid step renders TB strokes over TW flat pixel positions."""
    wm1 = jnp.float32(width - 1)

    # ---- per-stroke parameters, vectorized over the TB rows ----------------
    s = strokes_ref[...]                     # (TB, 6) f32, VMEM
    choice = s[:, 0:1]                       # (TB, 1)
    X = s[:, 1:2] * wm1 + 0.5
    Y = s[:, 2:3] * wm1 + 0.5
    rX = s[:, 3:4] * wm1 + 0.5
    rY = s[:, 4:5] * wm1 + 0.5
    color = s[:, 5:6]

    # hoisted per-row coefficients (per-row divides, not per-pixel)
    cX = jnp.float32(-0.5) / rX              # (TB, 1)
    cY = jnp.float32(-0.5) / rY
    hx = jnp.float32(0.5) * rX
    hy = jnp.float32(0.5) * rY
    hx2 = hx * hx
    hy2 = hy * hy

    # ---- flat pixel coordinates (precomputed in wrapper, resident in VMEM) --
    gx = coords_ref[0:1, :]                  # (1, TW)
    gy = coords_ref[1:2, :]

    dx = gx - X                              # (TB, TW)
    dy = gy - Y
    dx2 = dx * dx
    dy2 = dy * dy

    # ellipse / blur branch: exp is the only EUP op per element
    blur = jnp.exp(dx2 * cX + dy2 * cY) * color

    # rectangle branch: reuses dx2 / dy2, no abs
    in_square = (dx2 < hx2) & (dy2 < hy2)
    rect = jnp.where(in_square, color, jnp.float32(0.0))

    canvas = jnp.where(choice > 0.5, blur, rect)
    out_ref[...] = 1.0 - canvas

    # TODO(synk): optional v7x-only path — push the Gaussian exponent through
    # the idle MXU via a (TB,8)x(8,TW) dot (and an optional bf16 path on
    # v6e/v7x); skipped because default MXU/bf16 precision does not meet the
    # f32 1e-5 tolerance and it only pays off in the compute-bound regime.


def _choose_tiles(batch: int, ww: int, target_bytes: int = 8 * 1024 * 1024):
    """Pick (TB, TW): TB multiple of 8, TW multiple of 128, TB*TW*4 <= target."""
    b8 = _round_up(max(batch, 1), 8)
    ww128 = _round_up(ww, 128)

    # widest lane-dense pixel tile such that even an 8-row block fits target
    tw_cap = max(128, (target_bytes // (8 * 4) // 128) * 128)
    tw = min(ww128, tw_cap)

    # balanced batch split: no near-empty trailing block
    rows_cap = max(8, (target_bytes // (tw * 4) // 8) * 8)
    n_steps = _cdiv(b8, rows_cap)
    tb = _round_up(_cdiv(b8, n_steps), 8)
    return tb, tw


def rect_and_ellipse_stroke(strokes: jnp.ndarray, width: int,
                            block_b: int | None = None,
                            block_w: int | None = None) -> jnp.ndarray:
    """Pallas implementation of RectAndEllipseStroke.forward.

    strokes: (B, 6) float32
    returns: (B, width, width) float32
    """
    strokes = strokes.astype(jnp.float32)
    B = strokes.shape[0]
    WW = width * width

    tb_auto, tw_auto = _choose_tiles(B, WW)
    TB = block_b if block_b is not None else tb_auto
    TW = block_w if block_w is not None else tw_auto

    B_pad = _round_up(max(B, 1), TB)
    WW_pad = _round_up(WW, TW)

    if B_pad != B:
        # benign padding (finite math); padded rows are sliced off below
        pad = jnp.ones((B_pad - B, 6), jnp.float32)
        strokes_p = jnp.concatenate([strokes, pad], axis=0)
    else:
        strokes_p = strokes

    # flat pixel coords: p = i*W + j  ->  grid_x = i, grid_y = j  (exact ints)
    p = jnp.arange(WW_pad, dtype=jnp.int32)
    gx = (p // width).astype(jnp.float32)
    gy = (p % width).astype(jnp.float32)
    coords = jnp.stack([gx, gy], axis=0)     # (2, WW_pad)

    grid = (B_pad // TB, WW_pad // TW)
    kernel = functools.partial(_stroke_kernel, width=width)

    out_flat = pl.pallas_call(
        kernel,
        out_shape=jax.ShapeDtypeStruct((B_pad, WW_pad), jnp.float32),
        grid_spec=pltpu.PrefetchScalarGridSpec(
            num_scalar_prefetch=0,
            grid=grid,
            in_specs=[
                # strokes block: same block index across j -> stays resident
                pl.BlockSpec((TB, 6), lambda i, j: (i, 0)),
                # flat grid coords: depends only on the pixel-tile index
                pl.BlockSpec((2, TW), lambda i, j: (0, j)),
            ],
            out_specs=pl.BlockSpec((TB, TW), lambda i, j: (i, j)),
        ),
        compiler_params=pltpu.CompilerParams(
            dimension_semantics=("parallel", "parallel"),
            vmem_limit_bytes=32 * 1024 * 1024,
        ),
        cost_estimate=pl.CostEstimate(
            flops=13 * B_pad * WW_pad,
            transcendentals=B_pad * WW_pad,
            bytes_accessed=4 * B_pad * WW_pad + 24 * B_pad + 8 * WW_pad,
        ),
    )(strokes_p, coords)

    return out_flat[:B, :WW].reshape(B, width, width)


def _reference(strokes: jnp.ndarray, width: int) -> jnp.ndarray:
    """Pure-JAX reference mirroring the PyTorch forward (for verification)."""
    B = strokes.shape[0]
    wm1 = float(width - 1)
    gx = jnp.arange(width, dtype=jnp.float32).reshape(1, width, 1)
    gy = jnp.arange(width, dtype=jnp.float32).reshape(1, 1, width)
    choice = strokes[:, 0].reshape(B, 1, 1)
    X = (strokes[:, 1] * wm1 + 0.5).reshape(B, 1, 1)
    Y = (strokes[:, 2] * wm1 + 0.5).reshape(B, 1, 1)
    rX = (strokes[:, 3] * wm1 + 0.5).reshape(B, 1, 1)
    rY = (strokes[:, 4] * wm1 + 0.5).reshape(B, 1, 1)
    color = strokes[:, 5].reshape(B, 1, 1)
    blur = jnp.exp(-((gx - X) ** 2 / rX + (gy - Y) ** 2 / rY) / 2.0) * color
    in_square = ((gx - X < rX / 2) & (gx - X > -rX / 2)
                 & (gy - Y < rY / 2) & (gy - Y > -rY / 2))
    rect = jnp.where(in_square, color, 0.0)
    canvas = jnp.where(choice > 0.5, blur, rect)
    return 1.0 - canvas


def generate_strokes(key, batch_size: int) -> jnp.ndarray:
    """Deterministic analogue of RectAndEllipseStroke.generate_strokes."""
    s = 0.1 + 0.9 * jax.random.uniform(key, (batch_size, 6), dtype=jnp.float32)
    s = s.at[:, 3:5].set(s[:, 3:5] ** 1.5)
    return s


if __name__ == "__main__":
    batch_size = 4
    width = 16

    key = jax.random.PRNGKey(0)
    strokes = generate_strokes(key, batch_size)

    out = jax.block_until_ready(rect_and_ellipse_stroke(strokes, width))
    ref = _reference(strokes, width)
    assert out.shape == (batch_size, width, width)
    assert out.dtype == jnp.float32
    assert jnp.allclose(out, ref, atol=1e-5, rtol=1e-5)

    # exercise the 2-D grid path with padding on both the batch and pixel axes
    strokes2 = generate_strokes(jax.random.PRNGKey(1), 37)
    width2 = 20                                   # WW=400 -> padded pixel axis
    out2 = jax.block_until_ready(
        rect_and_ellipse_stroke(strokes2, width2, block_b=16, block_w=128))
    assert out2.shape == (37, width2, width2)
    assert jnp.allclose(out2, _reference(strokes2, width2), atol=1e-5, rtol=1e-5)

    print("KERNEL_OK")
</pallas_src>

<mosaic_0001>
module attributes {stable_mosaic.version = 11 : i64} {
  func.func @_stroke_kernel(%arg0: i32, %arg1: i32, %arg2: memref<8x6xf32, #tpu.memory_space<vmem>>, %arg3: memref<2x256xf32, #tpu.memory_space<vmem>>, %arg4: memref<8x256xf32, #tpu.memory_space<vmem>>) attributes {dimension_semantics = [#tpu.dimension_semantics<parallel>, #tpu.dimension_semantics<parallel>], iteration_bounds = array<i64: 1, 1>, scalar_prefetch = 0 : i64, scratch_operands = 0 : i64, tpu.core_type = #tpu.core_type<tc>, window_params = [{transform_indices = @transform_0, window_bounds = array<i64: 8, 6>}, {transform_indices = @transform_1, window_bounds = array<i64: 2, 256>}, {transform_indices = @transform_2, window_bounds = array<i64: 8, 256>}]} {
    %c0 = arith.constant 0 : index
    %c0_0 = arith.constant 0 : index
    %0 = vector.load %arg2[%c0, %c0_0] : memref<8x6xf32, #tpu.memory_space<vmem>>, vector<8x6xf32>
    %1 = vector.extract_strided_slice %0 {offsets = [0, 0], sizes = [8, 1], strides = [1, 1]} : vector<8x6xf32> to vector<8x1xf32>
    %2 = vector.extract_strided_slice %0 {offsets = [0, 1], sizes = [8, 1], strides = [1, 1]} : vector<8x6xf32> to vector<8x1xf32>
    %cst = arith.constant 1.500000e+01 : f32
    %3 = vector.broadcast %cst : f32 to vector<8x1xf32>
    %4 = arith.mulf %2, %3 : vector<8x1xf32>
    %cst_1 = arith.constant 5.000000e-01 : f32
    %5 = vector.broadcast %cst_1 : f32 to vector<8x1xf32>
    %6 = arith.addf %4, %5 : vector<8x1xf32>
    %7 = vector.extract_strided_slice %0 {offsets = [0, 2], sizes = [8, 1], strides = [1, 1]} : vector<8x6xf32> to vector<8x1xf32>
    %cst_2 = arith.constant 1.500000e+01 : f32
    %8 = vector.broadcast %cst_2 : f32 to vector<8x1xf32>
    %9 = arith.mulf %7, %8 : vector<8x1xf32>
    %cst_3 = arith.constant 5.000000e-01 : f32
    %10 = vector.broadcast %cst_3 : f32 to vector<8x1xf32>
    %11 = arith.addf %9, %10 : vector<8x1xf32>
    %12 = vector.extract_strided_slice %0 {offsets = [0, 3], sizes = [8, 1], strides = [1, 1]} : vector<8x6xf32> to vector<8x1xf32>
    %cst_4 = arith.constant 1.500000e+01 : f32
    %13 = vector.broadcast %cst_4 : f32 to vector<8x1xf32>
    %14 = arith.mulf %12, %13 : vector<8x1xf32>
    %cst_5 = arith.constant 5.000000e-01 : f32
    %15 = vector.broadcast %cst_5 : f32 to vector<8x1xf32>
    %16 = arith.addf %14, %15 : vector<8x1xf32>
    %17 = vector.extract_strided_slice %0 {offsets = [0, 4], sizes = [8, 1], strides = [1, 1]} : vector<8x6xf32> to vector<8x1xf32>
    %cst_6 = arith.constant 1.500000e+01 : f32
    %18 = vector.broadcast %cst_6 : f32 to vector<8x1xf32>
    %19 = arith.mulf %17, %18 : vector<8x1xf32>
    %cst_7 = arith.constant 5.000000e-01 : f32
    %20 = vector.broadcast %cst_7 : f32 to vector<8x1xf32>
    %21 = arith.addf %19, %20 : vector<8x1xf32>
    %22 = vector.extract_strided_slice %0 {offsets = [0, 5], sizes = [8, 1], strides = [1, 1]} : vector<8x6xf32> to vector<8x1xf32>
    %cst_8 = arith.constant -5.000000e-01 : f32
    %23 = vector.broadcast %cst_8 : f32 to vector<8x1xf32>
    %24 = arith.divf %23, %16 : vector<8x1xf32>
    %cst_9 = arith.constant -5.000000e-01 : f32
    %25 = vector.broadcast %cst_9 : f32 to vector<8x1xf32>
    %26 = arith.divf %25, %21 : vector<8x1xf32>
    %cst_10 = arith.constant 5.000000e-01 : f32
    %27 = vector.broadcast %cst_10 : f32 to vector<8x1xf32>
    %28 = arith.mulf %27, %16 : vector<8x1xf32>
    %cst_11 = arith.constant 5.000000e-01 : f32
    %29 = vector.broadcast %cst_11 : f32 to vector<8x1xf32>
    %30 = arith.mulf %29, %21 : vector<8x1xf32>
    %31 = arith.mulf %28, %28 : vector<8x1xf32>
    %32 = arith.mulf %30, %30 : vector<8x1xf32>
    %c0_12 = arith.constant 0 : index
    %c0_13 = arith.constant 0 : index
    %33 = vector.load %arg3[%c0_12, %c0_13] : memref<2x256xf32, #tpu.memory_space<vmem>>, vector<1x256xf32>
    %c1 = arith.constant 1 : index
    %c0_14 = arith.constant 0 : index
    %34 = vector.load %arg3[%c1, %c0_14] : memref<2x256xf32, #tpu.memory_space<vmem>>, vector<1x256xf32>
    %35 = vector.broadcast %33 : vector<1x256xf32> to vector<8x256xf32>
    %36 = vector.broadcast %6 : vector<8x1xf32> to vector<8x256xf32>
    %37 = arith.subf %35, %36 : vector<8x256xf32>
    %38 = vector.broadcast %34 : vector<1x256xf32> to vector<8x256xf32>
    %39 = vector.broadcast %11 : vector<8x1xf32> to vector<8x256xf32>
    %40 = arith.subf %38, %39 : vector<8x256xf32>
    %41 = arith.mulf %37, %37 : vector<8x256xf32>
    %42 = arith.mulf %40, %40 : vector<8x256xf32>
    %43 = vector.broadcast %24 : vector<8x1xf32> to vector<8x256xf32>
    %44 = arith.mulf %41, %43 : vector<8x256xf32>
    %45 = vector.broadcast %26 : vector<8x1xf32> to vector<8x256xf32>
    %46 = arith.mulf %42, %45 : vector<8x256xf32>
    %47 = arith.addf %44, %46 : vector<8x256xf32>
    %48 = math.exp %47 : vector<8x256xf32>
    %49 = vector.broadcast %22 : vector<8x1xf32> to vector<8x256xf32>
    %50 = arith.mulf %48, %49 : vector<8x256xf32>
    %51 = vector.broadcast %31 : vector<8x1xf32> to vector<8x256xf32>
    %52 = arith.cmpf olt, %41, %51 : vector<8x256xf32>
    %53 = vector.broadcast %32 : vector<8x1xf32> to vector<8x256xf32>
    %54 = arith.cmpf olt, %42, %53 : vector<8x256xf32>
    %55 = arith.andi %52, %54 : vector<8x256xi1>
    %cst_15 = arith.constant 0.000000e+00 : f32
    %56 = vector.shape_cast %22 : vector<8x1xf32> to vector<8x1xf32>
    %57 = vector.broadcast %56 : vector<8x1xf32> to vector<8x256xf32>
    %58 = vector.broadcast %cst_15 : f32 to vector<8x256xf32>
    %59 = arith.select %55, %57, %58 : vector<8x256xi1>, vector<8x256xf32>
    %cst_16 = arith.constant 5.000000e-01 : f32
    %60 = vector.broadcast %cst_16 : f32 to vector<8x1xf32>
    %61 = arith.cmpf ogt, %1, %60 : vector<8x1xf32>
    %62 = vector.shape_cast %61 : vector<8x1xi1> to vector<8x1xi1>
    %63 = vector.broadcast %62 : vector<8x1xi1> to vector<8x256xi1>
    %64 = arith.select %63, %50, %59 : vector<8x256xi1>, vector<8x256xf32>
    %cst_17 = arith.constant 1.000000e+00 : f32
    %65 = vector.broadcast %cst_17 : f32 to vector<8x256xf32>
    %66 = arith.subf %65, %64 : vector<8x256xf32>
    %c0_18 = arith.constant 0 : index
    %c0_19 = arith.constant 0 : index
    %67 = vector.load %arg4[%c0_18, %c0_19] : memref<8x256xf32, #tpu.memory_space<vmem>>, vector<8x256xf32>
    tpu.vector_store %arg4[%c0_18, %c0_19], %66 {strides = array<i32>} : memref<8x256xf32, #tpu.memory_space<vmem>>, vector<8x256xf32>,
    return
  }
  func.func @transform_0(%arg0: i32, %arg1: i32) -> (i32, i32) {
    %c0_i32 = arith.constant 0 : i32
    %c0_i32_0 = arith.constant 0 : i32
    return %arg0, %c0_i32 : i32, i32
  }
  func.func @transform_1(%arg0: i32, %arg1: i32) -> (i32, i32) {
    %c0_i32 = arith.constant 0 : i32
    %c0_i32_0 = arith.constant 0 : i32
    return %c0_i32, %arg1 : i32, i32
  }
  func.func @transform_2(%arg0: i32, %arg1: i32) -> (i32, i32) {
    %c0_i32 = arith.constant 0 : i32
    return %arg0, %arg1 : i32, i32
  }
}

</mosaic_0001>

<bundles_post_ra>
// kernel: tpu_custom_call.1
= control target key start
LH: loop header
LB: loop body
LE: loop exit
PB: predicated region body
PF: predicated region fallthrough
CT: control target
= control target key end

     0   :  { %7 = vsyncpa [#allocation3], 0  ;;  %s298_s0 = inlined_call_operand.hbm [shape: f32[8,6], index: 0, kind: input, shape index: {}]   ;;  %s299_s1 = inlined_call_operand.hbm [shape: f32[2,256], index: 1, kind: input, shape index: {}]   ;;  %s300_s2 = inlined_call_operand.hbm [shape: f32[8,256], index: 2, kind: output, shape index: {}]  }
   0x1   :  { %8 = vsyncpa [#allocation6], 0 }
   0x2   :  { %9 = vsyncpa [#allocation4], 0  ;;  %s15_s11 = sshll.u32 %s298_s0, 4  ;;  %s265_s12 = smov [#allocation2]   ;;  %s16_s11 = int_to_ptr.hbm [resolvable:$true] %s15_s11 }
   0x3   :  { %s17_s13 = sshll.u32 %s265_s12, 4  ;;  %s26_s16 = sshll.u32 %s299_s1, 4  ;;  %s18_s13 = int_to_ptr.vmem [resolvable:$true] %s17_s13  ;;  %s27_s16 = int_to_ptr.hbm [resolvable:$true] %s26_s16 }
   0x4   :  { %20 = dma.hbm_to_vmem [thread:$0]  %s16_s11, 128, %s18_s13, [#allocation3]  }
   0x5   :  { %s266_s17 = smov [#allocation5]  }
   0x6   :  { %s28_s18 = sshll.u32 %s266_s17, 4  ;;  %s29_s18 = int_to_ptr.vmem [resolvable:$true] %s28_s18 }
   0x7   :  { %31 = dma.hbm_to_vmem [thread:$0]  %s27_s16, 64, %s29_s18, [#allocation6]  }
   0x8   :  { %259 = dma.done.wait [#allocation3], 128  }
   0x9   :  { %260 = vsyncadd [#allocation3], 4294967168 }
   0xa   :  { %261 = dma.done.wait [#allocation6], 64  }
   0xb   :  { %262 = vsyncadd [#allocation6], 4294967232  ;;  %v267_v0 = vmov 1   ;;  %v268_v1 = vmov 3   ;;  %v40_v2 = vld [vmem:[#allocation2] sm:$0xff]  ;;  %v269_v9 = vmov 2  }
   0xc   :  { %172 = vset.pattern.permute.xlu0 %v267_v0  ;;  %174 = vset.pattern.permute.xlu1 %v268_v1  ;;  %v41_v3 = vmul.f32 15.0, %v40_v2  ;;  %v270_v16 = vmov 4   ;;  %vm133_vm4 = vcmp.gt.f32.partialorder %v40_v2, 0.5  ;;  %v271_v20 = vmov 0   ;;  %s273_s0 = smov [#allocation7]   ;;  %s152_s21 = sshll.u32 %s300_s2, 4  ;;  %s153_s21 = int_to_ptr.hbm [resolvable:$true] %s152_s21 }
   0xd   :  { %176 = vset.pattern.permute.xlu2 %v268_v1  ;;  %v134_v21 = vsel %vm133_vm4, 1, %v271_v20  ;;  %v272_v22 = vmov 5   ;;  %v60_v24 = vld [vmem:[#allocation5] ss:$2 sm:$0x3]  ;;  %s150_s1 = sshll.u32 %s273_s0, 4  ;;  %s151_s1 = int_to_ptr.vmem [resolvable:$true] %s150_s1 }
   0xe   :  { %v42_v4 = vadd.f32 0.5, %v41_v3  ;;  %v62_v25 = vld [vmem:[#allocation5 + $0x1] ss:$2 sm:$0x3]  ;;  %v64_v26 = vperm.slane %v60_v24, 0  ;;  %v65_v27 = vperm.slane %v60_v24, 1 }
   0xf   :  { %v76_v28 = vperm.slane %v62_v25, 0  ;;  %v77_v29 = vperm.slane %v62_v25, 1 }
  0x10   :  { %70 = vperm.xlu0 %172, %v42_v4   ;;  %181 = vrcp.f32 %v42_v4  ;;  %v58_v5 = vmul.f32 0.5, %v42_v4  ;;  %v54_v10 = vand.u32 2147483648, %v42_v4  ;;  %vm48_vm0 = vweird.f32 %v42_v4 }
  0x11   :  { %v52_v12 = vand.u32 2147483647, %v42_v4 }
  0x12   :  { %v59_v6 = vmul.f32 %v58_v5, %v58_v5  ;;  %v55_v14 = vor.u32 1.1754944e-38, %v54_v10 }
  0x13   :  { %vm53_vm3 = vcmp.eq.f32.partialorder %v52_v12, 8.507059e+37 }
  0x14   :  { %118 = vperm.xlu2 %176, %v59_v6  }
  0x16   :  { %v182_v7 = vpop.eup %181 }
  0x17   :  { %v44_v8 = vmul.f32 %v182_v7, %v42_v4  ;;  %vm49_vm1 = vweird.f32 %v182_v7 }
  0x18   :  { %173 = vset.pattern.permute.xlu0 %v269_v9  ;;  %vm50_vm2 = vmor %vm48_vm0, %vm49_vm1 }
  0x19   :  { %81 = vperm.xlu0 %173, %v42_v4   ;;  %v45_v11 = vsub.f32 1.0, %v44_v8 }
  0x1b   :  { %v46_v13 = vmul.f32 %v182_v7, %v45_v11 }
  0x1c   :  { %177 = vset.pattern.permute.xlu2 %v270_v16 }
  0x1d   :  { %v47_v15 = vadd.f32 %v182_v7, %v46_v13  ;;  %124 = vperm.xlu2 %177, %v59_v6  }
  0x1f   :  { %v51_v17 = vsel %vm50_vm2, %v182_v7, %v47_v15 }
  0x20   :  { %v56_v18 = vsel %vm53_vm3, %v55_v14, %v51_v17 }
  0x21   :  { %v57_v19 = vmul.f32 -0.5, %v56_v18  ;;  %180 = vset.pattern.permute.xlu0 %v271_v20 }
  0x23   :  { %92 = vperm.xlu1 %174, %v57_v19  }
  0x25   :  { %179 = vset.pattern.permute.xlu2 %v271_v20 }
  0x26   :  { %136 = vperm.xlu2 %179, %v134_v21  }
  0x2b   :  { %175 = vset.pattern.permute.xlu1 %v270_v16 }
  0x2c   :  { %98 = vperm.xlu1 %175, %v57_v19  }
  0x34   :  { %178 = vset.pattern.permute.xlu1 %v272_v22 }
  0x35   :  { %111 = vperm.xlu1 %178, %v40_v2  }
  0x6e   :  { %v119_v31 = vpop.permute.xlu2 %118 }
  0x77   :  { %v125_v46 = vpop.permute.xlu2 %124 }
  0x80   :  { %v137_v51 = vpop.permute.xlu2 %136 }
  0x81   :  { %vm138_vm9 = vcmp.eq.s32.totalorder %v137_v51, 1 }
  0x82   :  { %v71_v23 = vpop.permute.xlu0 %70 }
  0x83   :  { %v73_v33 = vsub.f32 %v64_v26, %v71_v23  ;;  %v74_v34 = vsub.f32 %v65_v27, %v71_v23 }
  0x85   :  { %v86_v37 = vmul.f32 %v73_v33, %v73_v33  ;;  %v87_v38 = vmul.f32 %v74_v34, %v74_v34 }
  0x87   :  { %vm121_vm5 = vcmp.lt.f32.partialorder %v86_v37, %v119_v31  ;;  %vm122_vm7 = vcmp.lt.f32.partialorder %v87_v38, %v119_v31 }
  0x8b   :  { %v82_v32 = vpop.permute.xlu0 %81 }
  0x8c   :  { %v84_v35 = vsub.f32 %v76_v28, %v82_v32  ;;  %v85_v36 = vsub.f32 %v77_v29, %v82_v32 }
  0x8e   :  { %v88_v39 = vmul.f32 %v84_v35, %v84_v35  ;;  %v89_v40 = vmul.f32 %v85_v36, %v85_v36 }
  0x90   :  { %vm127_vm6 = vcmp.lt.f32.partialorder %v88_v39, %v125_v46  ;;  %vm128_vm8 = vcmp.lt.f32.partialorder %v89_v40, %v125_v46 }
  0x91   :  { %vm129_vm10 = vmand %vm121_vm5, %vm127_vm6 }
  0x92   :  { %vm130_vm11 = vmand %vm122_vm7, %vm128_vm8 }
  0x95   :  { %v93_v30 = vpop.permute.xlu1 %92 }
  0x96   :  { %v95_v42 = vmul.f32 %v93_v30, %v86_v37  ;;  %v96_v43 = vmul.f32 %v93_v30, %v87_v38 }
  0x9e   :  { %v99_v41 = vpop.permute.xlu1 %98 }
  0x9f   :  { %v101_v44 = vmul.f32 %v99_v41, %v88_v39  ;;  %v102_v45 = vmul.f32 %v99_v41, %v89_v40 }
  0xa1   :  { %v103_v47 = vadd.f32 %v101_v44, %v95_v42  ;;  %v104_v48 = vadd.f32 %v102_v45, %v96_v43 }
  0xa3   :  { %v105_v49 = vmul.f32 1.442695, %v103_v47  ;;  %v107_v50 = vmul.f32 1.442695, %v104_v48 }
  0xa5   :  { %183 = vpow2.f32 %v105_v49 }
  0xa6   :  { %185 = vpow2.f32 %v107_v50 }
  0xa7   :  { %v112_v52 = vpop.permute.xlu1 %111 }
  0xa8   :  { %v131_v57 = vsel %vm129_vm10, %v112_v52, 0.0  ;;  %v132_v58 = vsel %vm130_vm11, %v112_v52, 0.0 }
  0xab   :  { %v184_v53 = vpop.eup %183 }
  0xac   :  { %v186_v54 = vpop.eup %185  ;;  %v114_v55 = vmul.f32 %v184_v53, %v112_v52 }
  0xad   :  { %v115_v56 = vmul.f32 %v186_v54, %v112_v52 }
  0xae   :  { %v139_v59 = vsel %vm138_vm9, %v114_v55, %v131_v57 }
  0xaf   :  { %v140_v60 = vsel %vm138_vm9, %v115_v56, %v132_v58  ;;  %v141_v61 = vsub.f32 1.0, %v139_v59 }
  0xb0   :  { %v142_v62 = vsub.f32 1.0, %v140_v60 }
  0xb1   :  { %143 = vst [vmem:[#allocation7] sm:$0xff] %v141_v61 }
  0xb2   :  { %144 = vst [vmem:[#allocation7 + $0x8] sm:$0xff] %v142_v62 }
  0xb3   :  { %155 = dma.vmem_to_hbm [thread:$0]  %s151_s1, 256, %s153_s21, [#allocation4]  }
  0xb4   :  { %263 = dma.done.wait [#allocation4], 256  }
  0xb5   :  { %264 = vsyncadd [#allocation4], 4294967040 }
  0xb6   :  { %160 = vsyncpa [#allocation3], 1 }
  0xb7   :  { %161 = vsyncpa [#allocation6], 1 }
  0xb8   :  { %162 = vsyncpa [#allocation4], 1 }

</bundles_post_ra>
